<compile_context>
chip_gen: v7x
topology: tpu7x:2x2x1
jax: 0.10.0
libtpu: 0.0.40
codegen_flags: <defaults>
</compile_context>

<pallas_src>
import jax
import jax.numpy as jnp
from jax.experimental import pallas as pl
from jax.experimental.pallas import tpu as pltpu

NUM_HEADS = 5
HEAD_WEIGHTS = (1.0, 0.5, 0.5, 1.0, 1.0)  # l1 + 0.5*l2 + 0.5*l3 + l4 + l_fusion


# --------------------------------------------------------------------------
# VMEM-aware tile sizing
# --------------------------------------------------------------------------
def _vmem_capacity_bytes():
    try:
        info = pltpu.get_tpu_info()
        cap = int(getattr(info, "vmem_capacity_bytes", 0))
        if cap > 0:
            return cap
    except Exception:
        pass
    return 64 * 1024 * 1024  # conservative fallback (v7x physical VMEM)


def _vmem_limit_bytes():
    # Scoped limit handed to the compiler: ~3/4 of physical, capped at 96 MiB.
    return min((_vmem_capacity_bytes() * 3) // 4, 96 * 1024 * 1024)


def _round_up8(x):
    return ((x + 7) // 8) * 8


def _choose_tile_n(n, c, in_bytes):
    """Rows per grid step.

    Accounts for BOTH the 2x double-buffered input blocks AND the in-kernel
    temporaries (class iota + target mask + d + exp(d) + their f32
    promotions, ~6 full-width f32 equivalents), targets >= ~2 MiB of streamed
    input per step (per-step overhead amortization), and prefers >= 4 grid
    steps so v7x can split the batch across both TensorCores.
    """
    limit = _vmem_limit_bytes()
    budget = max(limit - (2 << 20), limit // 2)

    # VMEM held simultaneously, per tile row.
    per_row = 2 * (NUM_HEADS * c * in_bytes + 8) + 6 * 4 * c
    t_vmem = max(8, budget // per_row)

    # Per-step efficiency floor: stream >= ~2 MiB of input per grid step.
    stream_per_row = NUM_HEADS * c * in_bytes + 4
    t_floor = _round_up8(-(-(2 << 20) // stream_per_row))

    t = min(n, t_vmem)

    # Megacore (v7x): prefer >= 4 grid steps when steps stay above the floor.
    t_split = _round_up8(-(-n // 4))
    if t_split >= t_floor:
        t = min(t, t_split)

    # Don't drop below the efficiency floor (unless batch / VMEM force it).
    t = max(t, min(t_floor, n))
    t = min(t, t_vmem, n)

    if t < n:
        t = max(8, (t // 8) * 8)  # (8, 128) sublane constraint for partial tiles
    return int(t)


# --------------------------------------------------------------------------
# Kernel
# --------------------------------------------------------------------------
def _make_kernel(n_rows, tile_n, n_classes):
    def kernel(labels_ref, f_ref, l_ref, r_ref, t_ref, fus_ref, out_ref):
        i = pl.program_id(0)

        lab = labels_ref[...]                                        # (tile_n, 1) i32
        row_ids = i * tile_n + jax.lax.broadcasted_iota(
            jnp.int32, (tile_n, 1), 0)                               # (tile_n, 1)
        valid = row_ids < n_rows                                     # mask ragged tail

        cls_ids = jax.lax.broadcasted_iota(
            jnp.int32, (tile_n, n_classes), 1)                       # (tile_n, C)
        tgt_mask = cls_ids == lab                                    # (tile_n, C) bool

        total = jnp.zeros((tile_n, 1), jnp.float32)
        for w, ref in zip(HEAD_WEIGHTS, (f_ref, l_ref, r_ref, t_ref, fus_ref)):
            lg = ref[...]                                            # input dtype
            m = jnp.max(lg, axis=-1, keepdims=True)                  # (tile_n, 1)
            d = lg - m                                               # one full-tile pass
            p = jnp.exp(d)                                           # EUP, native dtype
            sum_exp = jnp.sum(p.astype(jnp.float32),
                              axis=-1, keepdims=True)                # f32 accumulate
            tgt_d = jnp.sum(
                jnp.where(tgt_mask, d, jnp.zeros_like(d)).astype(jnp.float32),
                axis=-1, keepdims=True)                              # (tile_n, 1)
            # CE row loss: (m + log(sum exp(lg-m))) - lg_tgt = log(sum_exp) - d_tgt
            total = total + jnp.float32(w) * (jnp.log(sum_exp) - tgt_d)

        # zero out padded rows of the last tile; wrapper does sum / N
        out_ref[...] = jnp.where(valid, total, 0.0)

    return kernel


# --------------------------------------------------------------------------
# Wrapper
# --------------------------------------------------------------------------
def face2face_loss(features, labels, *, tile_n=None):
    """features: tuple of 5 arrays, each (N, C); labels: (N,) int.
    Returns the scalar weighted cross-entropy loss (f32)."""
    assert len(features) == NUM_HEADS
    n, c = features[0].shape
    for f in features:
        assert f.shape == (n, c)

    dtype_bytes = jnp.dtype(features[0].dtype).itemsize
    if tile_n is None:
        tile_n = _choose_tile_n(n, c, dtype_bytes)
    num_tiles = pl.cdiv(n, tile_n)
    n_pad = num_tiles * tile_n

    labels2d = labels.astype(jnp.int32).reshape(n, 1)

    cost = pl.CostEstimate(
        flops=5 * NUM_HEADS * n * c,
        transcendentals=NUM_HEADS * n * c,
        bytes_accessed=NUM_HEADS * n * c * dtype_bytes + n * 4 + n_pad * 4,
    )

    head_spec = pl.BlockSpec((tile_n, c), lambda i: (i, 0))
    per_row = pl.pallas_call(
        _make_kernel(n, tile_n, c),
        out_shape=jax.ShapeDtypeStruct((n_pad, 1), jnp.float32),
        grid=(num_tiles,),
        in_specs=[pl.BlockSpec((tile_n, 1), lambda i: (i, 0))]
        + [head_spec] * NUM_HEADS,
        out_specs=pl.BlockSpec((tile_n, 1), lambda i: (i, 0)),
        compiler_params=pltpu.CompilerParams(
            dimension_semantics=("parallel",),
            vmem_limit_bytes=_vmem_limit_bytes(),
        ),
        cost_estimate=cost,
    )(labels2d, *features)

    # tiny final reduction + single 1/N (one rounding, true N even when padded)
    return jnp.sum(per_row) / jnp.float32(n)


# --------------------------------------------------------------------------
# Pure-JAX reference (matches torch.nn.CrossEntropyLoss, reduction='mean')
# --------------------------------------------------------------------------
def _reference_loss(features, labels):
    total = 0.0
    for w, lg in zip(HEAD_WEIGHTS, features):
        lg = lg.astype(jnp.float32)
        logp = jax.nn.log_softmax(lg, axis=-1)
        nll = -jnp.take_along_axis(logp, labels[:, None], axis=-1)[:, 0]
        total = total + w * jnp.mean(nll)
    return total


if __name__ == "__main__":
    key = jax.random.PRNGKey(0)

    # primary test: batch=8, classes=16 (single tile)
    N, C = 8, 16
    keys = jax.random.split(key, NUM_HEADS + 1)
    features = tuple(
        jax.random.normal(keys[i], (N, C), dtype=jnp.float32)
        for i in range(NUM_HEADS)
    )
    labels = jax.random.randint(keys[NUM_HEADS], (N,), 0, C, dtype=jnp.int32)

    loss = face2face_loss(features, labels)
    jax.block_until_ready(loss)
    ref = _reference_loss(features, labels)
    assert jnp.allclose(loss, ref, atol=1e-5, rtol=1e-5), (loss, ref)

    # secondary test: multi-tile grid with a ragged last tile (masking path)
    N2 = 20
    keys2 = jax.random.split(jax.random.PRNGKey(1), NUM_HEADS + 1)
    features2 = tuple(
        jax.random.normal(keys2[i], (N2, C), dtype=jnp.float32)
        for i in range(NUM_HEADS)
    )
    labels2 = jax.random.randint(keys2[NUM_HEADS], (N2,), 0, C, dtype=jnp.int32)
    loss2 = face2face_loss(features2, labels2, tile_n=8)
    jax.block_until_ready(loss2)
    ref2 = _reference_loss(features2, labels2)
    assert jnp.allclose(loss2, ref2, atol=1e-5, rtol=1e-5), (loss2, ref2)

    print("KERNEL_OK")
</pallas_src>

<mosaic_0001>
module attributes {stable_mosaic.version = 11 : i64} {
  func.func @kernel(%arg0: i32, %arg1: memref<8x1xi32, #tpu.memory_space<vmem>>, %arg2: memref<8x16xf32, #tpu.memory_space<vmem>>, %arg3: memref<8x16xf32, #tpu.memory_space<vmem>>, %arg4: memref<8x16xf32, #tpu.memory_space<vmem>>, %arg5: memref<8x16xf32, #tpu.memory_space<vmem>>, %arg6: memref<8x16xf32, #tpu.memory_space<vmem>>, %arg7: memref<8x1xf32, #tpu.memory_space<vmem>>) attributes {dimension_semantics = [#tpu.dimension_semantics<parallel>], iteration_bounds = array<i64: 1>, scalar_prefetch = 0 : i64, scratch_operands = 0 : i64, tpu.core_type = #tpu.core_type<tc>, window_params = [{transform_indices = @transform_0, window_bounds = array<i64: 8, 1>}, {transform_indices = @transform_1, window_bounds = array<i64: 8, 16>}, {transform_indices = @transform_2, window_bounds = array<i64: 8, 16>}, {transform_indices = @transform_3, window_bounds = array<i64: 8, 16>}, {transform_indices = @transform_4, window_bounds = array<i64: 8, 16>}, {transform_indices = @transform_5, window_bounds = array<i64: 8, 16>}, {transform_indices = @transform_6, window_bounds = array<i64: 8, 1>}]} {
    %c0 = arith.constant 0 : index
    %c0_0 = arith.constant 0 : index
    %0 = vector.load %arg1[%c0, %c0_0] : memref<8x1xi32, #tpu.memory_space<vmem>>, vector<8x1xi32>
    %c8_i32 = arith.constant 8 : i32
    %1 = arith.muli %arg0, %c8_i32 : i32
    %2 = tpu.iota {dimensions = array<i32: 0>} : vector<8x1xi32>
    %3 = vector.broadcast %1 : i32 to vector<8x1xi32>
    %4 = arith.addi %3, %2 : vector<8x1xi32>
    %c8_i32_1 = arith.constant 8 : i32
    %5 = vector.broadcast %c8_i32_1 : i32 to vector<8x1xi32>
    %6 = arith.cmpi slt, %4, %5 : vector<8x1xi32>
    %7 = tpu.iota {dimensions = array<i32: 1>} : vector<8x16xi32>
    %8 = vector.broadcast %0 : vector<8x1xi32> to vector<8x16xi32>
    %9 = arith.cmpi eq, %7, %8 : vector<8x16xi32>
    %cst = arith.constant 0.000000e+00 : f32
    %10 = vector.broadcast %cst : f32 to vector<8x1xf32>
    %c0_2 = arith.constant 0 : index
    %c0_3 = arith.constant 0 : index
    %11 = vector.load %arg2[%c0_2, %c0_3] : memref<8x16xf32, #tpu.memory_space<vmem>>, vector<8x16xf32>
    %cst_4 = arith.constant dense<0xFF800000> : vector<8xf32>
    %12 = vector.multi_reduction <maximumf>, %11, %cst_4 [1] : vector<8x16xf32> to vector<8xf32>
    %13 = vector.shape_cast %12 : vector<8xf32> to vector<8x1xf32>
    %14 = vector.broadcast %13 : vector<8x1xf32> to vector<8x16xf32>
    %15 = arith.subf %11, %14 : vector<8x16xf32>
    %16 = math.exp %15 : vector<8x16xf32>
    %cst_5 = arith.constant dense<0.000000e+00> : vector<8xf32>
    %17 = vector.multi_reduction <add>, %16, %cst_5 [1] : vector<8x16xf32> to vector<8xf32>
    %18 = vector.shape_cast %17 : vector<8xf32> to vector<8x1xf32>
    %cst_6 = arith.constant 0.000000e+00 : f32
    %19 = vector.broadcast %cst_6 : f32 to vector<8x16xf32>
    %20 = arith.select %9, %15, %19 : vector<8x16xi1>, vector<8x16xf32>
    %cst_7 = arith.constant dense<0.000000e+00> : vector<8xf32>
    %21 = vector.multi_reduction <add>, %20, %cst_7 [1] : vector<8x16xf32> to vector<8xf32>
    %22 = vector.shape_cast %21 : vector<8xf32> to vector<8x1xf32>
    %23 = math.log %18 : vector<8x1xf32>
    %24 = arith.subf %23, %22 : vector<8x1xf32>
    %cst_8 = arith.constant 1.000000e+00 : f32
    %25 = vector.broadcast %cst_8 : f32 to vector<8x1xf32>
    %26 = arith.mulf %25, %24 : vector<8x1xf32>
    %27 = arith.addf %10, %26 : vector<8x1xf32>
    %c0_9 = arith.constant 0 : index
    %c0_10 = arith.constant 0 : index
    %28 = vector.load %arg3[%c0_9, %c0_10] : memref<8x16xf32, #tpu.memory_space<vmem>>, vector<8x16xf32>
    %cst_11 = arith.constant dense<0xFF800000> : vector<8xf32>
    %29 = vector.multi_reduction <maximumf>, %28, %cst_11 [1] : vector<8x16xf32> to vector<8xf32>
    %30 = vector.shape_cast %29 : vector<8xf32> to vector<8x1xf32>
    %31 = vector.broadcast %30 : vector<8x1xf32> to vector<8x16xf32>
    %32 = arith.subf %28, %31 : vector<8x16xf32>
    %33 = math.exp %32 : vector<8x16xf32>
    %cst_12 = arith.constant dense<0.000000e+00> : vector<8xf32>
    %34 = vector.multi_reduction <add>, %33, %cst_12 [1] : vector<8x16xf32> to vector<8xf32>
    %35 = vector.shape_cast %34 : vector<8xf32> to vector<8x1xf32>
    %cst_13 = arith.constant 0.000000e+00 : f32
    %36 = vector.broadcast %cst_13 : f32 to vector<8x16xf32>
    %37 = arith.select %9, %32, %36 : vector<8x16xi1>, vector<8x16xf32>
    %cst_14 = arith.constant dense<0.000000e+00> : vector<8xf32>
    %38 = vector.multi_reduction <add>, %37, %cst_14 [1] : vector<8x16xf32> to vector<8xf32>
    %39 = vector.shape_cast %38 : vector<8xf32> to vector<8x1xf32>
    %40 = math.log %35 : vector<8x1xf32>
    %41 = arith.subf %40, %39 : vector<8x1xf32>
    %cst_15 = arith.constant 5.000000e-01 : f32
    %42 = vector.broadcast %cst_15 : f32 to vector<8x1xf32>
    %43 = arith.mulf %42, %41 : vector<8x1xf32>
    %44 = arith.addf %27, %43 : vector<8x1xf32>
    %c0_16 = arith.constant 0 : index
    %c0_17 = arith.constant 0 : index
    %45 = vector.load %arg4[%c0_16, %c0_17] : memref<8x16xf32, #tpu.memory_space<vmem>>, vector<8x16xf32>
    %cst_18 = arith.constant dense<0xFF800000> : vector<8xf32>
    %46 = vector.multi_reduction <maximumf>, %45, %cst_18 [1] : vector<8x16xf32> to vector<8xf32>
    %47 = vector.shape_cast %46 : vector<8xf32> to vector<8x1xf32>
    %48 = vector.broadcast %47 : vector<8x1xf32> to vector<8x16xf32>
    %49 = arith.subf %45, %48 : vector<8x16xf32>
    %50 = math.exp %49 : vector<8x16xf32>
    %cst_19 = arith.constant dense<0.000000e+00> : vector<8xf32>
    %51 = vector.multi_reduction <add>, %50, %cst_19 [1] : vector<8x16xf32> to vector<8xf32>
    %52 = vector.shape_cast %51 : vector<8xf32> to vector<8x1xf32>
    %cst_20 = arith.constant 0.000000e+00 : f32
    %53 = vector.broadcast %cst_20 : f32 to vector<8x16xf32>
    %54 = arith.select %9, %49, %53 : vector<8x16xi1>, vector<8x16xf32>
    %cst_21 = arith.constant dense<0.000000e+00> : vector<8xf32>
    %55 = vector.multi_reduction <add>, %54, %cst_21 [1] : vector<8x16xf32> to vector<8xf32>
    %56 = vector.shape_cast %55 : vector<8xf32> to vector<8x1xf32>
    %57 = math.log %52 : vector<8x1xf32>
    %58 = arith.subf %57, %56 : vector<8x1xf32>
    %cst_22 = arith.constant 5.000000e-01 : f32
    %59 = vector.broadcast %cst_22 : f32 to vector<8x1xf32>
    %60 = arith.mulf %59, %58 : vector<8x1xf32>
    %61 = arith.addf %44, %60 : vector<8x1xf32>
    %c0_23 = arith.constant 0 : index
    %c0_24 = arith.constant 0 : index
    %62 = vector.load %arg5[%c0_23, %c0_24] : memref<8x16xf32, #tpu.memory_space<vmem>>, vector<8x16xf32>
    %cst_25 = arith.constant dense<0xFF800000> : vector<8xf32>
    %63 = vector.multi_reduction <maximumf>, %62, %cst_25 [1] : vector<8x16xf32> to vector<8xf32>
    %64 = vector.shape_cast %63 : vector<8xf32> to vector<8x1xf32>
    %65 = vector.broadcast %64 : vector<8x1xf32> to vector<8x16xf32>
    %66 = arith.subf %62, %65 : vector<8x16xf32>
    %67 = math.exp %66 : vector<8x16xf32>
    %cst_26 = arith.constant dense<0.000000e+00> : vector<8xf32>
    %68 = vector.multi_reduction <add>, %67, %cst_26 [1] : vector<8x16xf32> to vector<8xf32>
    %69 = vector.shape_cast %68 : vector<8xf32> to vector<8x1xf32>
    %cst_27 = arith.constant 0.000000e+00 : f32
    %70 = vector.broadcast %cst_27 : f32 to vector<8x16xf32>
    %71 = arith.select %9, %66, %70 : vector<8x16xi1>, vector<8x16xf32>
    %cst_28 = arith.constant dense<0.000000e+00> : vector<8xf32>
    %72 = vector.multi_reduction <add>, %71, %cst_28 [1] : vector<8x16xf32> to vector<8xf32>
    %73 = vector.shape_cast %72 : vector<8xf32> to vector<8x1xf32>
    %74 = math.log %69 : vector<8x1xf32>
    %75 = arith.subf %74, %73 : vector<8x1xf32>
    %cst_29 = arith.constant 1.000000e+00 : f32
    %76 = vector.broadcast %cst_29 : f32 to vector<8x1xf32>
    %77 = arith.mulf %76, %75 : vector<8x1xf32>
    %78 = arith.addf %61, %77 : vector<8x1xf32>
    %c0_30 = arith.constant 0 : index
    %c0_31 = arith.constant 0 : index
    %79 = vector.load %arg6[%c0_30, %c0_31] : memref<8x16xf32, #tpu.memory_space<vmem>>, vector<8x16xf32>
    %cst_32 = arith.constant dense<0xFF800000> : vector<8xf32>
    %80 = vector.multi_reduction <maximumf>, %79, %cst_32 [1] : vector<8x16xf32> to vector<8xf32>
    %81 = vector.shape_cast %80 : vector<8xf32> to vector<8x1xf32>
    %82 = vector.broadcast %81 : vector<8x1xf32> to vector<8x16xf32>
    %83 = arith.subf %79, %82 : vector<8x16xf32>
    %84 = math.exp %83 : vector<8x16xf32>
    %cst_33 = arith.constant dense<0.000000e+00> : vector<8xf32>
    %85 = vector.multi_reduction <add>, %84, %cst_33 [1] : vector<8x16xf32> to vector<8xf32>
    %86 = vector.shape_cast %85 : vector<8xf32> to vector<8x1xf32>
    %cst_34 = arith.constant 0.000000e+00 : f32
    %87 = vector.broadcast %cst_34 : f32 to vector<8x16xf32>
    %88 = arith.select %9, %83, %87 : vector<8x16xi1>, vector<8x16xf32>
    %cst_35 = arith.constant dense<0.000000e+00> : vector<8xf32>
    %89 = vector.multi_reduction <add>, %88, %cst_35 [1] : vector<8x16xf32> to vector<8xf32>
    %90 = vector.shape_cast %89 : vector<8xf32> to vector<8x1xf32>
    %91 = math.log %86 : vector<8x1xf32>
    %92 = arith.subf %91, %90 : vector<8x1xf32>
    %cst_36 = arith.constant 1.000000e+00 : f32
    %93 = vector.broadcast %cst_36 : f32 to vector<8x1xf32>
    %94 = arith.mulf %93, %92 : vector<8x1xf32>
    %95 = arith.addf %78, %94 : vector<8x1xf32>
    %cst_37 = arith.constant 0.000000e+00 : f32
    %96 = vector.broadcast %cst_37 : f32 to vector<8x1xf32>
    %97 = arith.select %6, %95, %96 : vector<8x1xi1>, vector<8x1xf32>
    %c0_38 = arith.constant 0 : index
    %c0_39 = arith.constant 0 : index
    %98 = vector.load %arg7[%c0_38, %c0_39] : memref<8x1xf32, #tpu.memory_space<vmem>>, vector<8x1xf32>
    tpu.vector_store %arg7[%c0_38, %c0_39], %97 {strides = array<i32>} : memref<8x1xf32, #tpu.memory_space<vmem>>, vector<8x1xf32>,
    return
  }
  func.func @transform_0(%arg0: i32) -> (i32, i32) {
    %c0_i32 = arith.constant 0 : i32
    %c0_i32_0 = arith.constant 0 : i32
    return %arg0, %c0_i32 : i32, i32
  }
  func.func @transform_1(%arg0: i32) -> (i32, i32) {
    %c0_i32 = arith.constant 0 : i32
    %c0_i32_0 = arith.constant 0 : i32
    return %arg0, %c0_i32 : i32, i32
  }
  func.func @transform_2(%arg0: i32) -> (i32, i32) {
    %c0_i32 = arith.constant 0 : i32
    %c0_i32_0 = arith.constant 0 : i32
    return %arg0, %c0_i32 : i32, i32
  }
  func.func @transform_3(%arg0: i32) -> (i32, i32) {
    %c0_i32 = arith.constant 0 : i32
    %c0_i32_0 = arith.constant 0 : i32
    return %arg0, %c0_i32 : i32, i32
  }
  func.func @transform_4(%arg0: i32) -> (i32, i32) {
    %c0_i32 = arith.constant 0 : i32
    %c0_i32_0 = arith.constant 0 : i32
    return %arg0, %c0_i32 : i32, i32
  }
  func.func @transform_5(%arg0: i32) -> (i32, i32) {
    %c0_i32 = arith.constant 0 : i32
    %c0_i32_0 = arith.constant 0 : i32
    return %arg0, %c0_i32 : i32, i32
  }
  func.func @transform_6(%arg0: i32) -> (i32, i32) {
    %c0_i32 = arith.constant 0 : i32
    %c0_i32_0 = arith.constant 0 : i32
    return %arg0, %c0_i32 : i32, i32
  }
}

</mosaic_0001>

<bundles_post_ra>
// kernel: tpu_custom_call.1
= control target key start
LH: loop header
LB: loop body
LE: loop exit
PB: predicated region body
PF: predicated region fallthrough
CT: control target
= control target key end

     0   :  { %11 = vsyncpa [#allocation3], 0  ;;  %s341_s0 = inlined_call_operand.vmem [shape: s32[8,1], index: 0, kind: input, shape index: {}]   ;;  %s342_s1 = inlined_call_operand.vmem [shape: f32[8,16], index: 1, kind: input, shape index: {}]   ;;  %s343_s2 = inlined_call_operand.vmem [shape: f32[8,16], index: 2, kind: input, shape index: {}]   ;;  %s344_s3 = inlined_call_operand.hbm [shape: f32[8,16], index: 3, kind: input, shape index: {}]   ;;  %s345_s4 = inlined_call_operand.vmem [shape: f32[8,16], index: 4, kind: input, shape index: {}]   ;;  %s346_s5 = inlined_call_operand.hbm [shape: f32[8,16], index: 5, kind: input, shape index: {}]   ;;  %s347_s6 = inlined_call_operand.vmem [shape: f32[8,1], index: 6, kind: output, shape index: {}]  }
   0x1   :  { %12 = vsyncpa [#allocation5], 0  ;;  %s235_s21 = smov [#allocation2]   ;;  %s236_s23 = smov [#allocation4]  }
   0x2   :  { %s25_s22 = sshll.u32 %s235_s21, 4  ;;  %s37_s24 = sshll.u32 %s236_s23, 4  ;;  %s26_s22 = int_to_ptr.vmem [resolvable:$true] %s25_s22  ;;  %s38_s24 = int_to_ptr.vmem [resolvable:$true] %s37_s24 }
   0x3   :  { %s187_s27 = scalar_lea.hbm %s344_s3, 128 }
   0x4   :  { %p188_p0 = scmp.ne.s32.totalorder %s344_s3, %s187_s27  ;;  %p191_p1 = scmp.lt.u32.totalorder %s187_s27, %s344_s3 }
   0x6   :  { %p193_p2 = pnand %p191_p1, %p188_p0 }
   0x8   :  { %196 = shalt.err (!%p193_p2)
}
   0x9   :  { %s197_s8 = scalar_lea.vmem %s26_s22, 128  ;;  %p202_p4 = scmp.lt.s32.totalorder %s26_s22, %s26_s22 }
   0xa   :  { %p198_p3 = scmp.ne.s32.totalorder %s26_s22, %s197_s8  ;;  %p203_p5 = scmp.lt.s32.totalorder %s197_s8, %s197_s8 }
   0xc   :  { %p204_p6 = por %p203_p5, %p202_p4 }
   0xe   :  { %p205_p7 = pnand %p204_p6, %p198_p3 }
  0x10   :  { %208 = shalt.err (!%p205_p7)
}
  0x11   :  { %28 = dma.hbm_to_vmem [thread:$0]  %s344_s3, 128, %s26_s22, [#allocation3]  }
  0x12   :  { %s209_s13 = scalar_lea.hbm %s346_s5, 128 }
  0x13   :  { %p210_p8 = scmp.ne.s32.totalorder %s346_s5, %s209_s13  ;;  %p213_p9 = scmp.lt.u32.totalorder %s209_s13, %s346_s5 }
  0x15   :  { %p215_p10 = pnand %p213_p9, %p210_p8 }
  0x17   :  { %218 = shalt.err (!%p215_p10)
}
  0x18   :  { %s219_s18 = scalar_lea.vmem %s38_s24, 128  ;;  %p224_p12 = scmp.lt.s32.totalorder %s38_s24, %s38_s24 }
  0x19   :  { %p220_p11 = scmp.ne.s32.totalorder %s38_s24, %s219_s18  ;;  %p225_p13 = scmp.lt.s32.totalorder %s219_s18, %s219_s18 }
  0x1b   :  { %p226_p0 = por %p225_p13, %p224_p12 }
  0x1d   :  { %p227_p1 = pnand %p226_p0, %p220_p11 }
  0x1f   :  { %230 = shalt.err (!%p227_p1)
}
  0x20   :  { %40 = dma.hbm_to_vmem [thread:$0]  %s346_s5, 128, %s38_s24, [#allocation5]  }
  0x21   :  { %231 = dma.done.wait [#allocation3], 128  }
  0x22   :  { %232 = vsyncadd [#allocation3], 4294967168 }
  0x23   :  { %233 = dma.done.wait [#allocation5], 128  }
  0x24   :  { %234 = vsyncadd [#allocation5], 4294967168  ;;  %v237_v0 = vmov 0   ;;  %vm61_vm0 = vcmask 130048   ;;  %v98_v1 = vld [vmem:[#allocation2] sm:$0xff]  ;;  %v79_v2 = vld [vmem:[%s343_s2] sm:$0xff]  ;;  %v54_v30 = vlaneseq }
  0x25   :  { %165 = vset.pattern.permute.xlu1 %v237_v0  ;;  %166 = vset.pattern.permute.xlu0 %v237_v0  ;;  %v117_v3 = vld [vmem:[%s345_s4] sm:$0xff]  ;;  %v99_v4 = vsel %vm61_vm0, %v98_v1, -inf  ;;  %v80_v5 = vsel %vm61_vm0, %v79_v2, -inf  ;;  %vm154_vm2 = vcmask 7168  }
  0x26   :  { %v60_v6 = vld [vmem:[%s342_s1] sm:$0xff]  ;;  %100 = vmax.xlane.f32.xlu1 %v99_v4  ;;  %81 = vmax.xlane.f32.xlu0 %v80_v5  ;;  %v118_v7 = vsel %vm61_vm0, %v117_v3, -inf  ;;  %v55_v34 = vand.u32 127, %v54_v30 }
  0x27   :  { %v62_v8 = vsel %vm61_vm0, %v60_v6, -inf  ;;  %v135_v9 = vld [vmem:[#allocation4] sm:$0xff] }
  0x28   :  { %v136_v10 = vsel %vm61_vm0, %v135_v9, -inf  ;;  %v47_v11 = vld [vmem:[%s341_s0] sm:$0xff] }
  0x2a   :  { %119 = vmax.xlane.f32.xlu1 %v118_v7  ;;  %63 = vmax.xlane.f32.xlu0 %v62_v8 }
  0x2e   :  { %137 = vmax.xlane.f32.xlu0 %v136_v10 }
  0x3b   :  { %57 = vperm.xlu1 %165, %v47_v11  }
  0xb3   :  { %v101_v12 = vpop.xlane.xlu1 %100  ;;  %v82_v13 = vpop.xlane.xlu0 %81 }
  0xb4   :  { %v102_v14 = vsub.f32 %v98_v1, %v101_v12  ;;  %v83_v15 = vsub.f32 %v79_v2, %v82_v13 }
  0xb6   :  { %v84_v16 = vmul.f32 1.442695, %v83_v15  ;;  %v103_v18 = vmul.f32 1.442695, %v102_v14 }
  0xb7   :  { %v64_v17 = vpop.xlane.xlu0 %63  ;;  %v120_v19 = vpop.xlane.xlu1 %119 }
  0xb8   :  { %v65_v20 = vsub.f32 %v60_v6, %v64_v17  ;;  %167 = vpow2.f32 %v84_v16  ;;  %v121_v21 = vsub.f32 %v117_v3, %v120_v19 }
  0xb9   :  { %169 = vpow2.f32 %v103_v18 }
  0xba   :  { %v66_v22 = vmul.f32 1.442695, %v65_v20  ;;  %v122_v25 = vmul.f32 1.442695, %v121_v21 }
  0xbb   :  { %v138_v23 = vpop.xlane.xlu0 %137  ;;  %v58_v37 = vpop.permute.xlu1 %57 }
  0xbc   :  { %v139_v24 = vsub.f32 %v135_v9, %v138_v23  ;;  %171 = vpow2.f32 %v66_v22  ;;  %vm318_vm1 = vcmp.eq.s32.totalorder %v55_v34, %v58_v37 }
  0xbd   :  { %v89_v41 = vsel %vm318_vm1, %v83_v15, 0.0  ;;  %v71_v43 = vsel %vm318_vm1, %v65_v20, 0.0  ;;  %v108_v45 = vsel %vm318_vm1, %v102_v14, 0.0  ;;  %v127_v47 = vsel %vm318_vm1, %v121_v21, 0.0 }
  0xbe   :  { %v140_v26 = vmul.f32 1.442695, %v139_v24  ;;  %v90_v42 = vsel %vm61_vm0, %v89_v41, 0.0  ;;  %v72_v44 = vsel %vm61_vm0, %v71_v43, 0.0  ;;  %v109_v46 = vsel %vm61_vm0, %v108_v45, 0.0 }
  0xbf   :  { %v128_v48 = vsel %vm61_vm0, %v127_v47, 0.0  ;;  %v145_v49 = vsel %vm318_vm1, %v139_v24, 0.0 }
  0xc0   :  { %173 = vpow2.f32 %v140_v26  ;;  %v146_v50 = vsel %vm61_vm0, %v145_v49, 0.0 }
  0xc1   :  { %175 = vpow2.f32 %v122_v25 }
  0xc2   :  { %v168_v27 = vpop.eup %167 }
  0xc3   :  { %v86_v28 = vsel %vm61_vm0, %v168_v27, 0.0  ;;  %v170_v29 = vpop.eup %169 }
  0xc4   :  { %87 = vadd.xlane.f32.xlu0 %v86_v28  ;;  %v105_v35 = vsel %vm61_vm0, %v170_v29, 0.0 }
  0xc6   :  { %v172_v31 = vpop.eup %171 }
  0xc7   :  { %v68_v32 = vsel %vm61_vm0, %v172_v31, 0.0 }
  0xc8   :  { %69 = vadd.xlane.f32.xlu0 %v68_v32 }
  0xca   :  { %v174_v33 = vpop.eup %173 }
  0xcb   :  { %v176_v36 = vpop.eup %175  ;;  %v142_v38 = vsel %vm61_vm0, %v174_v33, 0.0 }
  0xcc   :  { %143 = vadd.xlane.f32.xlu1 %v142_v38  ;;  %106 = vadd.xlane.f32.xlu0 %v105_v35  ;;  %v124_v40 = vsel %vm61_vm0, %v176_v36, 0.0 }
  0xd0   :  { %125 = vadd.xlane.f32.xlu0 %v124_v40 }
  0xd4   :  { %91 = vadd.xlane.f32.xlu0 %v90_v42 }
  0xd8   :  { %73 = vadd.xlane.f32.xlu0 %v72_v44 }
  0xdc   :  { %110 = vadd.xlane.f32.xlu0 %v109_v46 }
  0xe0   :  { %129 = vadd.xlane.f32.xlu0 %v128_v48 }
  0xe4   :  { %147 = vadd.xlane.f32.xlu0 %v146_v50 }
 0x151   :  { %v88_v51 = vpop.xlane.xlu0 %87 }
 0x152   :  { %177 = vlog2.f32 %v88_v51 }
 0x155   :  { %v70_v52 = vpop.xlane.xlu0 %69 }
 0x156   :  { %179 = vlog2.f32 %v70_v52 }
 0x159   :  { %v107_v53 = vpop.xlane.xlu0 %106  ;;  %v144_v55 = vpop.xlane.xlu1 %143 }
 0x15a   :  { %181 = vlog2.f32 %v107_v53 }
 0x15c   :  { %v178_v56 = vpop.eup %177 }
 0x15d   :  { %v126_v54 = vpop.xlane.xlu0 %125  ;;  %v94_v59 = vmul.f32 0.6931472, %v178_v56 }
 0x15e   :  { %183 = vlog2.f32 %v126_v54 }
 0x15f   :  { %185 = vlog2.f32 %v144_v55 }
 0x160   :  { %v180_v58 = vpop.eup %179 }
 0x161   :  { %v92_v57 = vpop.xlane.xlu0 %91  ;;  %v76_v63 = vmul.f32 0.6931472, %v180_v58 }
 0x162   :  { %v95_v62 = vsub.f32 %v94_v59, %v92_v57 }
 0x164   :  { %v182_v60 = vpop.eup %181  ;;  %v96_v4 = vmul.f32 0.5, %v95_v62 }
 0x165   :  { %v74_v61 = vpop.xlane.xlu0 %73  ;;  %v113_v1 = vmul.f32 0.6931472, %v182_v60 }
 0x166   :  { %v77_v0 = vsub.f32 %v76_v63, %v74_v61 }
 0x168   :  { %v184_v2 = vpop.eup %183  ;;  %v97_v7 = vadd.f32 %v96_v4, %v77_v0 }
 0x169   :  { %v111_v3 = vpop.xlane.xlu0 %110  ;;  %v186_v6 = vpop.eup %185  ;;  %v132_v9 = vmul.f32 0.6931472, %v184_v2 }
 0x16a   :  { %v114_v5 = vsub.f32 %v113_v1, %v111_v3  ;;  %v150_v13 = vmul.f32 0.6931472, %v186_v6 }
 0x16c   :  { %v115_v8 = vmul.f32 0.5, %v114_v5 }
 0x16d   :  { %v130_v10 = vpop.xlane.xlu0 %129 }
 0x16e   :  { %v116_v11 = vadd.f32 %v115_v8, %v97_v7  ;;  %v133_v12 = vsub.f32 %v132_v9, %v130_v10 }
 0x170   :  { %v134_v15 = vadd.f32 %v133_v12, %v116_v11 }
 0x171   :  { %v148_v14 = vpop.xlane.xlu0 %147 }
 0x172   :  { %v151_v16 = vsub.f32 %v150_v13, %v148_v14 }
 0x174   :  { %v152_v17 = vadd.f32 %v151_v16, %v134_v15 }
 0x176   :  { %155 = vst.msk [vmem:[%s347_s6] sm:$0xff] %vm154_vm2, %v152_v17 }
 0x177   :  { %160 = vsyncpa [#allocation3], 1 }
 0x178   :  { %161 = vsyncpa [#allocation5], 1 }

</bundles_post_ra>
